<compile_context>
chip_gen: v7x
topology: tpu7x:2x2x1
jax: 0.10.0
libtpu: 0.0.40
codegen_flags: <defaults>
</compile_context>

<pallas_src>
import functools

import jax
import jax.numpy as jnp
from jax.experimental import pallas as pl
from jax.experimental.pallas import tpu as pltpu


def _reduce_sys_enc_kernel(x_ref, w_ref, b_ref, o_ref, *, compute_dtype):
    # x_ref: (tb, K)  w_ref: (K, N)  b_ref: (1, N)  o_ref: (tb, N)
    x = x_ref[...].astype(compute_dtype)
    w = w_ref[...].astype(compute_dtype)
    y = jnp.dot(x, w, preferred_element_type=jnp.float32)        # MXU, f32 acc
    y = jnp.maximum(y + b_ref[...].astype(jnp.float32), 0.0)     # f32 epilogue
    o_ref[...] = y.astype(o_ref.dtype)


def _round_up(v, m):
    return (v + m - 1) // m * m


def _cdiv(a, b):
    return -(-a // b)


_SINGLE_BLOCK_MAX_ROWS = 1024  # above this, always tile (>=2 tiles for v7x megacore)


@functools.partial(jax.jit, static_argnames=("tile_b", "compute_dtype"))
def _reduce_sys_enc_impl(x, w_t, b, tile_b, compute_dtype):
    batch, k = x.shape
    kw, n = w_t.shape
    assert k == kw, (k, kw)
    out_dtype = x.dtype
    bias = jnp.asarray(b).reshape(1, n)

    kernel = functools.partial(_reduce_sys_enc_kernel, compute_dtype=compute_dtype)

    # ---- small-batch fast path: one full-array block, no grid, no padding ----
    if batch <= min(_SINGLE_BLOCK_MAX_ROWS, tile_b):
        return pl.pallas_call(
            kernel,
            out_shape=jax.ShapeDtypeStruct((batch, n), out_dtype),
        )(x, w_t, bias)

    # ---- large-batch path: balanced batch tiles, weights/bias resident ----
    num_tiles = max(2, _cdiv(batch, tile_b))          # >=2 tiles for v7x megacore
    tb = _round_up(_cdiv(batch, num_tiles), 8)        # balanced, sublane-aligned
    b_pad = num_tiles * tb                            # wastes at most a few rows

    x_in = x if b_pad == batch else jnp.pad(x, ((0, b_pad - batch), (0, 0)))

    # VMEM footprint: resident weights + bias, double-buffered x and out tiles.
    x_bytes = jnp.dtype(x.dtype).itemsize
    o_bytes = jnp.dtype(out_dtype).itemsize
    footprint = (
        k * n * jnp.dtype(w_t.dtype).itemsize
        + n * jnp.dtype(bias.dtype).itemsize
        + 2 * tb * k * x_bytes
        + 2 * tb * n * o_bytes
    )
    compiler_kwargs = {"dimension_semantics": ("parallel",)}
    if footprint > 12 * 1024 * 1024:  # above conservative scoped defaults (v5e 16 MiB)
        compiler_kwargs["vmem_limit_bytes"] = min(int(footprint * 2), 60 * 1024 * 1024)

    out = pl.pallas_call(
        kernel,
        out_shape=jax.ShapeDtypeStruct((b_pad, n), out_dtype),
        grid=(num_tiles,),
        in_specs=[
            pl.BlockSpec((tb, k), lambda i: (i, 0)),   # x: batch-tiled, full K
            pl.BlockSpec((k, n), lambda i: (0, 0)),    # weights resident
            pl.BlockSpec((1, n), lambda i: (0, 0)),    # bias resident
        ],
        out_specs=pl.BlockSpec((tb, n), lambda i: (i, 0)),
        compiler_params=pltpu.CompilerParams(**compiler_kwargs),
    )(x_in, w_t, bias)

    return out if b_pad == batch else out[:batch]


def reduce_sys_enc(x, w_t, b, *, tile_b=4096, compute_dtype=jnp.bfloat16):
    """Pallas equivalent of F.relu(nn.Linear(sys_enc_size, enc_reduce_size)(x)).

    x   : (batch, sys_enc_size)
    w_t : (sys_enc_size, enc_reduce_size)  (PyTorch weight transposed)
    b   : (enc_reduce_size,) or (1, enc_reduce_size)
    """
    return _reduce_sys_enc_impl(x, w_t, b, tile_b, compute_dtype)


def init_params(key, sys_enc_size, enc_reduce_size):
    """Mimics nn.Linear default init: uniform(-1/sqrt(fan_in), 1/sqrt(fan_in))."""
    kw, kb = jax.random.split(key)
    bound = 1.0 / jnp.sqrt(jnp.float32(sys_enc_size))
    # PyTorch weight is (out, in); store its transpose (in, out) for the kernel.
    w_t = jax.random.uniform(
        kw, (sys_enc_size, enc_reduce_size), jnp.float32, minval=-bound, maxval=bound
    )
    b = jax.random.uniform(
        kb, (1, enc_reduce_size), jnp.float32, minval=-bound, maxval=bound
    )
    return w_t, b


if __name__ == "__main__":
    sys_enc_size = 32
    enc_reduce_size = 16
    batch = 8

    key = jax.random.PRNGKey(0)
    kx, kp = jax.random.split(key)

    x = jax.random.normal(kx, (batch, sys_enc_size), jnp.float32)
    w_t, b = init_params(kp, sys_enc_size, enc_reduce_size)

    out = jax.block_until_ready(reduce_sys_enc(x, w_t, b))
    assert out.shape == (batch, enc_reduce_size)
    assert out.dtype == x.dtype

    # Reference with the same bf16-input / f32-accumulate math.
    ref_bf16 = jnp.maximum(
        jnp.dot(x.astype(jnp.bfloat16), w_t.astype(jnp.bfloat16),
                preferred_element_type=jnp.float32) + b, 0.0)
    assert jnp.allclose(out, ref_bf16, atol=2e-2, rtol=2e-2), \
        float(jnp.abs(out - ref_bf16).max())

    # Sanity check against exact f32 math (loose tolerance for bf16 MXU inputs).
    ref_f32 = jnp.maximum(x @ w_t + b, 0.0)
    assert jnp.allclose(out, ref_f32, atol=1e-1, rtol=1e-1)

    # Exact-parity path (compute_dtype=f32).
    out_f32 = jax.block_until_ready(
        reduce_sys_enc(x, w_t, b, compute_dtype=jnp.float32))
    assert jnp.allclose(out_f32, ref_f32, atol=1e-5, rtol=1e-5)

    # Exercise the batch-tiled grid path (balanced tiles + ragged-batch padding).
    big_batch = 2056
    xb = jax.random.normal(jax.random.PRNGKey(1), (big_batch, sys_enc_size), jnp.float32)
    out_b = jax.block_until_ready(reduce_sys_enc(xb, w_t, b, tile_b=1024))
    ref_b = jnp.maximum(
        jnp.dot(xb.astype(jnp.bfloat16), w_t.astype(jnp.bfloat16),
                preferred_element_type=jnp.float32) + b, 0.0)
    assert out_b.shape == (big_batch, enc_reduce_size)
    assert jnp.allclose(out_b, ref_b, atol=2e-2, rtol=2e-2)

    print("KERNEL_OK")
</pallas_src>

<mosaic_0001>
module attributes {stable_mosaic.version = 11 : i64} {
  func.func @_reduce_sys_enc_kernel(%arg0: memref<8x32xf32, #tpu.memory_space<vmem>>, %arg1: memref<32x16xf32, #tpu.memory_space<vmem>>, %arg2: memref<1x16xf32, #tpu.memory_space<vmem>>, %arg3: memref<8x16xf32, #tpu.memory_space<vmem>>) attributes {dimension_semantics = [], scalar_prefetch = 0 : i64, scratch_operands = 0 : i64, tpu.core_type = #tpu.core_type<tc>} {
    %c0 = arith.constant 0 : index
    %c0_0 = arith.constant 0 : index
    %0 = vector.load %arg0[%c0, %c0_0] : memref<8x32xf32, #tpu.memory_space<vmem>>, vector<8x32xf32>
    %1 = arith.truncf %0 : vector<8x32xf32> to vector<8x32xbf16>
    %c0_1 = arith.constant 0 : index
    %c0_2 = arith.constant 0 : index
    %2 = vector.load %arg1[%c0_1, %c0_2] : memref<32x16xf32, #tpu.memory_space<vmem>>, vector<32x16xf32>
    %3 = arith.truncf %2 : vector<32x16xf32> to vector<32x16xbf16>
    %cst = arith.constant dense<0.000000e+00> : vector<8x16xf32>
    %4 = tpu.matmul %1, %3, %cst {dimension_numbers = #tpu.dot_dimension_numbers<[1], [0], [0], [1], [0, 0, 1, 1], [], []>} : vector<8x32xbf16>, vector<32x16xbf16>, vector<8x16xf32> -> vector<8x16xf32>
    %c0_3 = arith.constant 0 : index
    %c0_4 = arith.constant 0 : index
    %5 = vector.load %arg2[%c0_3, %c0_4] : memref<1x16xf32, #tpu.memory_space<vmem>>, vector<1x16xf32>
    %6 = vector.broadcast %5 : vector<1x16xf32> to vector<8x16xf32>
    %7 = arith.addf %4, %6 : vector<8x16xf32>
    %cst_5 = arith.constant 0.000000e+00 : f32
    %8 = vector.broadcast %cst_5 : f32 to vector<8x16xf32>
    %9 = arith.maximumf %7, %8 : vector<8x16xf32>
    %c0_6 = arith.constant 0 : index
    %c0_7 = arith.constant 0 : index
    %10 = vector.load %arg3[%c0_6, %c0_7] : memref<8x16xf32, #tpu.memory_space<vmem>>, vector<8x16xf32>
    tpu.vector_store %arg3[%c0_6, %c0_7], %9 {strides = array<i32>} : memref<8x16xf32, #tpu.memory_space<vmem>>, vector<8x16xf32>,
    return
  }
}

</mosaic_0001>

<bundles_post_ra>
// kernel: _reduce_sys_enc_impl.1
= control target key start
LH: loop header
LB: loop body
LE: loop exit
PB: predicated region body
PF: predicated region fallthrough
CT: control target
= control target key end

     0   :  { %v132_v3 = vmov 0.0   ;;  %vm133_vm0 = vmmov 0   ;;  %s185_s0 = inlined_call_operand.vmem [shape: f32[8,32], index: 0, kind: input, shape index: {}]   ;;  %s186_s1 = inlined_call_operand.vmem [shape: f32[32,16], index: 1, kind: input, shape index: {}]   ;;  %s187_s2 = inlined_call_operand.vmem [shape: f32[1,16], index: 2, kind: input, shape index: {}]   ;;  %s188_s3 = inlined_call_operand.hbm [shape: f32[8,16], index: 3, kind: output, shape index: {}]  }
   0x1   :  { %v18_v0 = vld [vmem:[%s186_s1] sm:$0xff]  ;;  %v19_v1 = vld [vmem:[%s186_s1 + $0x8] sm:$0xff]  ;;  %v20_v2 = vld [vmem:[%s186_s1 + $0x10] sm:$0xff]  ;;  %97 = vmatprep.subr.bf16.mxu0 %v132_v3  ;;  %101 = vmatprep.mubr.msk.bf16.mxu0 %vm133_vm0, %v132_v3 }
   0x2   :  { %v22_v4 = vpack.c.bf16 %v19_v1, %v18_v0  ;;  %v21_v5 = vld [vmem:[%s186_s1 + $0x18] sm:$0xff] }
   0x3   :  { %8 = vsyncpa [#allocation3], 0  ;;  %v23_v6 = vpack.c.bf16 %v21_v5, %v20_v2  ;;  %v16_v7 = vld [vmem:[%s185_s0] sm:$0xff]  ;;  %vm31_vm1 = vcmask 261120   ;;  %s134_s1 = smov [#allocation2]   ;;  %vm76_vm2 = vcmask 130048  }
   0x4   :  { %98 = vmatpush3.bf16.msra.mxu0 %v22_v4  ;;  %v17_v8 = vpack.c.bf16 %v16_v7, %v16_v7  ;;  %v92_v9 = vld [vmem:[%s187_s2] ss:$0 sm:$0xff]  ;;  %s84_s24 = sshll.u32 %s134_s1, 4  ;;  %s85_s24 = int_to_ptr.vmem [resolvable:$true] %s84_s24 }
   0x5   :  { %99 = vmatprep.subr.bf16.mxu0 %v132_v3  ;;  %s108_s0 = scalar_lea.vmem %s85_s24, 128  ;;  %p113_p1 = scmp.lt.s32.totalorder %s85_s24, %s85_s24 }
   0x6   :  { %p109_p0 = scmp.ne.s32.totalorder %s85_s24, %s108_s0  ;;  %p114_p2 = scmp.lt.s32.totalorder %s108_s0, %s108_s0 }
   0x8   :  { %100 = vmatpush3.bf16.msra.mxu0 %v23_v6  ;;  %p115_p3 = por %p114_p2, %p113_p1 }
   0xa   :  { %p116_p4 = pnand %p115_p3, %p109_p0 }
   0xb   :  { %102 = vmatmul.mubr.msk.bf16.vlgmr.msra.gmra.mrb[0].mxu0 %vm31_vm1, %v17_v8 }
  0xde   :  { %v69_v10 = vpop.f32.mrb[0].mxu0 }
  0xdf   :  { %v70_v11 = vadd.f32 %v92_v9, %v69_v10  ;;  %v103_v12 = vpop.f32.mrb[1].mxu0 }
  0xe0   :  { %v72_v13 = vpop.f32.mrb[2].mxu0 }
  0xe1   :  { %v75_v14 = vmax.f32 %v70_v11, 0.0  ;;  %v104_v15 = vpop.f32.mrb[3].mxu0 }
  0xe3   :  { %77 = vst.msk [vmem:[#allocation2] sm:$0xff] %vm76_vm2, %v75_v14 }
  0xe4   :  { %119 = shalt.err (!%p116_p4)
}
  0xe5   :  { %s120_s26 = scalar_lea.hbm %s188_s3, 128 }
  0xe6   :  { %p121_p5 = scmp.ne.s32.totalorder %s188_s3, %s120_s26  ;;  %p124_p6 = scmp.lt.u32.totalorder %s120_s26, %s188_s3 }
  0xe8   :  { %p126_p7 = pnand %p124_p6, %p121_p5 }
  0xea   :  { %129 = shalt.err (!%p126_p7)
}
  0xeb   :  { %87 = dma.vmem_to_hbm [thread:$0]  %s85_s24, 128, %s188_s3, [#allocation3]  }
  0xec   :  { %130 = dma.done.wait [#allocation3], 128  }
  0xed   :  { %131 = vsyncadd [#allocation3], 4294967168 }
  0xee   :  { %91 = vsyncpa [#allocation3], 1 }

</bundles_post_ra>
